<compile_context>
chip_gen: v7x
topology: tpu7x:2x2x1
jax: 0.10.0
libtpu: 0.0.40
codegen_flags: <defaults>
</compile_context>

<pallas_src>
import functools

import jax
import jax.numpy as jnp
import numpy as np
from jax.experimental import pallas as pl
from jax.experimental.pallas import tpu as pltpu


_NUM_SHARDS = 2   # outer "parallel" grid axis: 2 TCs on v7x, serial (cheap) elsewhere


def _cdiv(a, b):
    return (a + b - 1) // b


def _round_up(x, m):
    return ((x + m - 1) // m) * m


def _sublane(itemsize):
    # Native sublane tile: 8 rows for 4-byte, 16 for 2-byte, 32 for 1-byte dtypes.
    return max(8, 32 // max(1, int(itemsize)))


def _choose_tile_rows(rows, hw, itemsize, target_bytes, max_rows=2048):
    """Pick a row tile (multiple of the dtype sublane tile) ~target_bytes big."""
    sub = _sublane(itemsize)
    t = target_bytes // max(1, hw * itemsize)
    t = int(max(sub, min(max_rows, t)))
    t = (t // sub) * sub
    t = min(t, _round_up(rows, sub))
    return max(sub, t)


def _vmem_plan():
    """(hm_tile_target_bytes, sal_tile_target_bytes, vmem_limit_bytes)."""
    try:
        cap = int(pltpu.get_tpu_info().vmem_capacity_bytes)
    except Exception:
        cap = 64 * 1024 * 1024
    if cap >= 96 * 1024 * 1024:
        # v5e / v6e: 128 MiB VMEM -> bigger tiles, fewer grid steps.
        return 4 * 1024 * 1024, 2 * 1024 * 1024, 96 * 1024 * 1024
    # v7x: 64 MiB physical VMEM -> smaller tiles, headroom for f32 temporaries.
    return 2 * 1024 * 1024, 1 * 1024 * 1024, 48 * 1024 * 1024


def _jointsal_kernel(out_hm_ref, tgt_hm_ref, out_sal_ref, tgt_sal_ref,
                     out_m_ref, tgt_m_ref, part_ref,
                     mse_acc, kl_acc, cc_acc,
                     *, n_hm_tiles, n_sal_tiles, hm_per_shard, sal_per_shard,
                     tile_hm, tile_sal, hm_rows, sal_rows, n_cls_rows):
    f32 = jnp.float32
    c = pl.program_id(0)               # shard (parallel axis)
    i = pl.program_id(1)               # row-tile step within the shard (arbitrary)
    last = pl.num_programs(1) - 1

    @pl.when(i == 0)
    def _init():
        mse_acc[...] = jnp.zeros_like(mse_acc)
        kl_acc[...] = jnp.zeros_like(kl_acc)
        cc_acc[...] = jnp.zeros_like(cc_acc)

    g_hm = c * hm_per_shard + i        # global heatmap tile index of this step
    g_sal = c * sal_per_shard + i      # global saliency tile index of this step

    # ---- 0.5 * MSE partial: mask ragged rows, VALU slab-accumulate into (8, HW) ----
    @pl.when(jnp.logical_and(i < hm_per_shard, g_hm < n_hm_tiles))
    def _hm():
        o = out_hm_ref[...].astype(f32)
        t = tgt_hm_ref[...].astype(f32)
        hw = o.shape[1]
        row = jax.lax.broadcasted_iota(jnp.int32, (tile_hm, 1), 0)
        valid = (row + g_hm * tile_hm) < hm_rows          # (tile_hm, 1)
        d = o - t
        d2 = jnp.where(valid, d * d, 0.0)
        mse_acc[...] += jnp.sum(d2.reshape(tile_hm // 8, 8, hw), axis=0)

    # ---- KLDiv + corr-coef partials over saliency row tiles ----
    @pl.when(jnp.logical_and(i < sal_per_shard, g_sal < n_sal_tiles))
    def _sal():
        x = out_sal_ref[...].astype(f32)                  # log-probs (tile_sal, HW)
        y = tgt_sal_ref[...].astype(f32)                  # probs     (tile_sal, HW)
        hw = x.shape[1]
        inv_hw = 1.0 / float(hw)
        row = jax.lax.broadcasted_iota(jnp.int32, (tile_sal, 1), 0)
        valid = (row + g_sal * tile_sal) < sal_rows       # (tile_sal, 1)

        # PyTorch KLDivLoss pointwise: y * (log y - x), zero where y <= 0.
        pos = jnp.logical_and(y > 0, valid)
        safe_log_y = jnp.log(jnp.where(y > 0, y, 1.0))
        kl_pt = jnp.where(pos, y * (safe_log_y - x), 0.0)
        kl_acc[...] += jnp.sum(kl_pt.reshape(tile_sal // 8, 8, hw), axis=0)

        # Pearson r per (n, c) map via non-centered moments; exact-f32 per-row
        # lane reductions (no MXU dots, no ones-column RHS, no xm/ym temps).
        sx = jnp.sum(x, axis=1, keepdims=True)
        sy = jnp.sum(y, axis=1, keepdims=True)
        sxx = jnp.sum(x * x, axis=1, keepdims=True)
        syy = jnp.sum(y * y, axis=1, keepdims=True)
        sxy = jnp.sum(x * y, axis=1, keepdims=True)
        mx = sx * inv_hw
        my = sy * inv_hw
        cov = sxy * inv_hw - mx * my
        vx = sxx * inv_hw - mx * mx
        vy = syy * inv_hw - my * my
        den = jnp.where(valid, vx * vy, 1.0)
        r = jnp.where(valid, -cov * jax.lax.rsqrt(den), 0.0)   # (tile_sal, 1)
        cc_acc[...] += jnp.sum(r.reshape(tile_sal // 8, 8, 1), axis=0)

    # ---- epilogue: cross-entropy (tiny, resident) + write per-shard partials ----
    @pl.when(i == last)
    def _fin():
        logits = out_m_ref[...].astype(f32)               # (N, C)
        tgt = tgt_m_ref[...]                              # (N, 1) int32
        col = jax.lax.broadcasted_iota(jnp.int32, logits.shape, 1)
        onehot = (col == tgt).astype(f32)
        mxl = jnp.max(logits, axis=1, keepdims=True)
        lse = mxl + jnp.log(jnp.sum(jnp.exp(logits - mxl), axis=1, keepdims=True))
        ce = -jnp.sum(onehot * (logits - lse)) / float(n_cls_rows)

        mse_part = jnp.sum(mse_acc[...])
        kl_part = jnp.sum(kl_acc[...])
        cc_part = jnp.sum(cc_acc[...])
        ce_part = jnp.where(c == 0, ce, 0.0)              # CE counted once

        lane = jax.lax.broadcasted_iota(jnp.int32, part_ref.shape, 1)
        part_ref[...] = (jnp.where(lane == 0, mse_part, 0.0)
                         + jnp.where(lane == 1, kl_part, 0.0)
                         + jnp.where(lane == 2, cc_part, 0.0)
                         + jnp.where(lane == 3, ce_part, 0.0))


def jointsal_loss(output, target, output_m, target_m, output_sal, target_sal):
    B, J, H, W = output.shape
    Bs, Cs, Hs, Ws = output_sal.shape
    hm_rows, hm_hw = B * J, H * W
    sal_rows, sal_hw = Bs * Cs, Hs * Ws

    # Layout plumbing only (free row-major collapses; no dtype casts, no padding).
    o2 = output.reshape(hm_rows, hm_hw)
    t2 = target.reshape(hm_rows, hm_hw)
    os2 = output_sal.reshape(sal_rows, sal_hw)
    ts2 = target_sal.reshape(sal_rows, sal_hw)
    om = output_m
    tm = target_m.astype(jnp.int32).reshape(-1, 1)
    N, C = om.shape

    hm_target, sal_target, vmem_limit = _vmem_plan()
    tile_hm = _choose_tile_rows(hm_rows, hm_hw, jnp.dtype(o2.dtype).itemsize,
                                hm_target)
    tile_sal = _choose_tile_rows(sal_rows, sal_hw, jnp.dtype(os2.dtype).itemsize,
                                 sal_target)

    n_hm_tiles = _cdiv(hm_rows, tile_hm)
    n_sal_tiles = _cdiv(sal_rows, tile_sal)
    hm_per_shard = _cdiv(n_hm_tiles, _NUM_SHARDS)
    sal_per_shard = _cdiv(n_sal_tiles, _NUM_SHARDS)
    steps = max(hm_per_shard, sal_per_shard, 1)

    # Clamp to the shard's own last tile (no cross-shard re-DMA when one stream
    # finishes earlier than the other), then clamp globally.
    hm_map = lambda c, i: (
        jnp.minimum(c * hm_per_shard + jnp.minimum(i, hm_per_shard - 1),
                    n_hm_tiles - 1), 0)
    sal_map = lambda c, i: (
        jnp.minimum(c * sal_per_shard + jnp.minimum(i, sal_per_shard - 1),
                    n_sal_tiles - 1), 0)
    const_map = lambda c, i: (0, 0)
    part_map = lambda c, i: (c, 0)

    kernel = functools.partial(
        _jointsal_kernel,
        n_hm_tiles=n_hm_tiles, n_sal_tiles=n_sal_tiles,
        hm_per_shard=hm_per_shard, sal_per_shard=sal_per_shard,
        tile_hm=tile_hm, tile_sal=tile_sal,
        hm_rows=hm_rows, sal_rows=sal_rows, n_cls_rows=N)

    parts = pl.pallas_call(
        kernel,
        out_shape=jax.ShapeDtypeStruct((_NUM_SHARDS * 8, 128), jnp.float32),
        grid_spec=pltpu.PrefetchScalarGridSpec(
            num_scalar_prefetch=0,
            grid=(_NUM_SHARDS, steps),
            in_specs=[
                pl.BlockSpec((tile_hm, hm_hw), hm_map),
                pl.BlockSpec((tile_hm, hm_hw), hm_map),
                pl.BlockSpec((tile_sal, sal_hw), sal_map),
                pl.BlockSpec((tile_sal, sal_hw), sal_map),
                pl.BlockSpec((N, C), const_map),      # logits, resident
                pl.BlockSpec((N, 1), const_map),      # class indices, resident
            ],
            out_specs=pl.BlockSpec((8, 128), part_map),
            scratch_shapes=[
                pltpu.VMEM((8, hm_hw), jnp.float32),   # MSE slab accumulator
                pltpu.VMEM((8, sal_hw), jnp.float32),  # KL  slab accumulator
                pltpu.VMEM((8, 1), jnp.float32),       # corr-coef accumulator
            ]),
        compiler_params=pltpu.CompilerParams(
            dimension_semantics=("parallel", "arbitrary"),
            vmem_limit_bytes=vmem_limit),
    )(o2, t2, os2, ts2, om, tm)

    # Tiny cross-shard combine (a handful of scalar ops) in the wrapper.
    parts = parts.reshape(_NUM_SHARDS, 8, 128)[:, 0, :]
    mse = jnp.sum(parts[:, 0]) / float(hm_rows * hm_hw)
    kl = jnp.sum(parts[:, 1]) / float(sal_rows * sal_hw)
    cc = jnp.sum(parts[:, 2]) / float(sal_rows)
    ce = jnp.sum(parts[:, 3])
    return 0.5 * mse + ce + 1.0 * kl + 0.2 * cc


def _reference_loss(output, target, output_m, target_m, output_sal, target_sal):
    """Pure-JAX reference reproducing the PyTorch semantics."""
    mse = jnp.mean((output - target) ** 2)

    logp = jax.nn.log_softmax(output_m, axis=-1)
    ce = -jnp.mean(jnp.take_along_axis(logp, target_m[:, None].astype(jnp.int32),
                                       axis=1))

    y = target_sal
    x = output_sal
    kl = jnp.mean(jnp.where(y > 0, y * (jnp.log(jnp.where(y > 0, y, 1.0)) - x), 0.0))

    B, C, H, W = output_sal.shape
    xr = output_sal.reshape(B * C, H * W)
    yr = target_sal.reshape(B * C, H * W)
    xm = xr - xr.mean(axis=1, keepdims=True)
    ym = yr - yr.mean(axis=1, keepdims=True)
    r_num = jnp.mean(xm * ym, axis=1)
    r_den = jnp.sqrt(jnp.mean(xm ** 2, axis=1) * jnp.mean(ym ** 2, axis=1))
    cc = jnp.mean(-r_num / r_den)

    return 0.5 * mse + ce + 1.0 * kl + 0.2 * cc


if __name__ == "__main__":
    key = jax.random.PRNGKey(0)
    k1, k2, k3, k4, k5, k6 = jax.random.split(key, 6)

    B, J, H, W = 2, 4, 16, 16   # pose heatmaps
    C = 8                        # classification classes
    Cs = 4                       # saliency channels

    output = jax.random.normal(k1, (B, J, H, W), dtype=jnp.float32)
    target = jax.random.normal(k2, (B, J, H, W), dtype=jnp.float32)

    output_m = jax.random.normal(k3, (B, C), dtype=jnp.float32)
    target_m = jax.random.randint(k4, (B,), 0, C, dtype=jnp.int32)

    # KLDivLoss expects log-probabilities as input and probabilities as target.
    sal_lo = jax.random.normal(k5, (B, Cs, H, W), dtype=jnp.float32)
    sal_lt = jax.random.normal(k6, (B, Cs, H, W), dtype=jnp.float32)
    output_sal = jax.nn.log_softmax(sal_lo.reshape(B, Cs, H * W), axis=-1
                                    ).reshape(B, Cs, H, W)
    target_sal = jax.nn.softmax(sal_lt.reshape(B, Cs, H * W), axis=-1
                                ).reshape(B, Cs, H, W)

    loss = jointsal_loss(output, target, output_m, target_m,
                         output_sal, target_sal)
    loss = jax.block_until_ready(loss)

    ref = _reference_loss(output, target, output_m, target_m,
                          output_sal, target_sal)
    np.testing.assert_allclose(np.asarray(loss), np.asarray(ref),
                               rtol=1e-4, atol=1e-5)

    print("KERNEL_OK")
</pallas_src>

<mosaic_0001>
module attributes {stable_mosaic.version = 11 : i64} {
  func.func @_jointsal_kernel(%arg0: i32, %arg1: i32, %arg2: memref<8x256xf32, #tpu.memory_space<vmem>>, %arg3: memref<8x256xf32, #tpu.memory_space<vmem>>, %arg4: memref<8x256xf32, #tpu.memory_space<vmem>>, %arg5: memref<8x256xf32, #tpu.memory_space<vmem>>, %arg6: memref<2x8xf32, #tpu.memory_space<vmem>>, %arg7: memref<2x1xi32, #tpu.memory_space<vmem>>, %arg8: memref<8x128xf32, #tpu.memory_space<vmem>>, %arg9: memref<8x256xf32, #tpu.memory_space<vmem>>, %arg10: memref<8x256xf32, #tpu.memory_space<vmem>>, %arg11: memref<8x1xf32, #tpu.memory_space<vmem>>) attributes {dimension_semantics = [#tpu.dimension_semantics<parallel>, #tpu.dimension_semantics<arbitrary>], iteration_bounds = array<i64: 2, 1>, scalar_prefetch = 0 : i64, scratch_operands = 3 : i64, tpu.core_type = #tpu.core_type<tc>, window_params = [{transform_indices = @transform_0, window_bounds = array<i64: 8, 256>}, {transform_indices = @transform_1, window_bounds = array<i64: 8, 256>}, {transform_indices = @transform_2, window_bounds = array<i64: 8, 256>}, {transform_indices = @transform_3, window_bounds = array<i64: 8, 256>}, {pipeline_mode = #tpu.pipeline_mode<synchronous>, transform_indices = @transform_4, window_bounds = array<i64: 2, 8>}, {pipeline_mode = #tpu.pipeline_mode<synchronous>, transform_indices = @transform_5, window_bounds = array<i64: 2, 1>}, {transform_indices = @transform_6, window_bounds = array<i64: 8, 128>}]} {
    %c0_i32 = arith.constant 0 : i32
    %0 = arith.cmpi eq, %arg1, %c0_i32 : i32
    %1 = arith.extui %0 : i1 to i32
    %c0_i32_0 = arith.constant 0 : i32
    %2 = arith.cmpi ne, %1, %c0_i32_0 : i32
    scf.if %2 {
      %cst = arith.constant 0.000000e+00 : f32
      %20 = vector.broadcast %cst : f32 to vector<8x256xf32>
      %c0 = arith.constant 0 : index
      %c0_10 = arith.constant 0 : index
      %21 = vector.load %arg9[%c0, %c0_10] : memref<8x256xf32, #tpu.memory_space<vmem>>, vector<8x256xf32>
      tpu.vector_store %arg9[%c0, %c0_10], %20 {strides = array<i32>} : memref<8x256xf32, #tpu.memory_space<vmem>>, vector<8x256xf32>,
      %cst_11 = arith.constant 0.000000e+00 : f32
      %22 = vector.broadcast %cst_11 : f32 to vector<8x256xf32>
      %c0_12 = arith.constant 0 : index
      %c0_13 = arith.constant 0 : index
      %23 = vector.load %arg10[%c0_12, %c0_13] : memref<8x256xf32, #tpu.memory_space<vmem>>, vector<8x256xf32>
      tpu.vector_store %arg10[%c0_12, %c0_13], %22 {strides = array<i32>} : memref<8x256xf32, #tpu.memory_space<vmem>>, vector<8x256xf32>,
      %cst_14 = arith.constant 0.000000e+00 : f32
      %24 = vector.broadcast %cst_14 : f32 to vector<8x1xf32>
      %c0_15 = arith.constant 0 : index
      %c0_16 = arith.constant 0 : index
      %25 = vector.load %arg11[%c0_15, %c0_16] : memref<8x1xf32, #tpu.memory_space<vmem>>, vector<8x1xf32>
      tpu.vector_store %arg11[%c0_15, %c0_16], %24 {strides = array<i32>} : memref<8x1xf32, #tpu.memory_space<vmem>>, vector<8x1xf32>,
    } else {
    }
    %c1_i32 = arith.constant 1 : i32
    %3 = arith.muli %arg0, %c1_i32 : i32
    %4 = arith.addi %3, %arg1 : i32
    %c1_i32_1 = arith.constant 1 : i32
    %5 = arith.muli %arg0, %c1_i32_1 : i32
    %6 = arith.addi %5, %arg1 : i32
    %c1_i32_2 = arith.constant 1 : i32
    %7 = arith.cmpi slt, %arg1, %c1_i32_2 : i32
    %c1_i32_3 = arith.constant 1 : i32
    %8 = arith.cmpi slt, %4, %c1_i32_3 : i32
    %9 = arith.andi %7, %8 : i1
    %10 = arith.extui %9 : i1 to i32
    %c0_i32_4 = arith.constant 0 : i32
    %11 = arith.cmpi ne, %10, %c0_i32_4 : i32
    scf.if %11 {
      %c0 = arith.constant 0 : index
      %c0_10 = arith.constant 0 : index
      %20 = vector.load %arg2[%c0, %c0_10] : memref<8x256xf32, #tpu.memory_space<vmem>>, vector<8x256xf32>
      %c0_11 = arith.constant 0 : index
      %c0_12 = arith.constant 0 : index
      %21 = vector.load %arg3[%c0_11, %c0_12] : memref<8x256xf32, #tpu.memory_space<vmem>>, vector<8x256xf32>
      %22 = tpu.iota {dimensions = array<i32: 0>} : vector<8x1xi32>
      %c8_i32 = arith.constant 8 : i32
      %23 = arith.muli %4, %c8_i32 : i32
      %24 = vector.broadcast %23 : i32 to vector<8x1xi32>
      %25 = arith.addi %22, %24 : vector<8x1xi32>
      %c8_i32_13 = arith.constant 8 : i32
      %26 = vector.broadcast %c8_i32_13 : i32 to vector<8x1xi32>
      %27 = arith.cmpi slt, %25, %26 : vector<8x1xi32>
      %28 = arith.subf %20, %21 : vector<8x256xf32>
      %29 = arith.mulf %28, %28 : vector<8x256xf32>
      %cst = arith.constant 0.000000e+00 : f32
      %30 = vector.shape_cast %27 : vector<8x1xi1> to vector<8x1xi1>
      %31 = vector.broadcast %30 : vector<8x1xi1> to vector<8x256xi1>
      %32 = vector.broadcast %cst : f32 to vector<8x256xf32>
      %33 = arith.select %31, %29, %32 : vector<8x256xi1>, vector<8x256xf32>
      %c0_14 = arith.constant 0 : index
      %c0_15 = arith.constant 0 : index
      %34 = vector.load %arg9[%c0_14, %c0_15] : memref<8x256xf32, #tpu.memory_space<vmem>>, vector<8x256xf32>
      %35 = vector.shape_cast %33 : vector<8x256xf32> to vector<1x8x256xf32>
      %cst_16 = arith.constant dense<0.000000e+00> : vector<8x256xf32>
      %36 = vector.multi_reduction <add>, %35, %cst_16 [0] : vector<1x8x256xf32> to vector<8x256xf32>
      %37 = arith.addf %34, %36 : vector<8x256xf32>
      %c0_17 = arith.constant 0 : index
      %c0_18 = arith.constant 0 : index
      %38 = vector.load %arg9[%c0_17, %c0_18] : memref<8x256xf32, #tpu.memory_space<vmem>>, vector<8x256xf32>
      tpu.vector_store %arg9[%c0_17, %c0_18], %37 {strides = array<i32>} : memref<8x256xf32, #tpu.memory_space<vmem>>, vector<8x256xf32>,
    } else {
    }
    %c1_i32_5 = arith.constant 1 : i32
    %12 = arith.cmpi slt, %arg1, %c1_i32_5 : i32
    %c1_i32_6 = arith.constant 1 : i32
    %13 = arith.cmpi slt, %6, %c1_i32_6 : i32
    %14 = arith.andi %12, %13 : i1
    %15 = arith.extui %14 : i1 to i32
    %c0_i32_7 = arith.constant 0 : i32
    %16 = arith.cmpi ne, %15, %c0_i32_7 : i32
    scf.if %16 {
      %c0 = arith.constant 0 : index
      %c0_10 = arith.constant 0 : index
      %20 = vector.load %arg4[%c0, %c0_10] : memref<8x256xf32, #tpu.memory_space<vmem>>, vector<8x256xf32>
      %c0_11 = arith.constant 0 : index
      %c0_12 = arith.constant 0 : index
      %21 = vector.load %arg5[%c0_11, %c0_12] : memref<8x256xf32, #tpu.memory_space<vmem>>, vector<8x256xf32>
      %22 = tpu.iota {dimensions = array<i32: 0>} : vector<8x1xi32>
      %c8_i32 = arith.constant 8 : i32
      %23 = arith.muli %6, %c8_i32 : i32
      %24 = vector.broadcast %23 : i32 to vector<8x1xi32>
      %25 = arith.addi %22, %24 : vector<8x1xi32>
      %c8_i32_13 = arith.constant 8 : i32
      %26 = vector.broadcast %c8_i32_13 : i32 to vector<8x1xi32>
      %27 = arith.cmpi slt, %25, %26 : vector<8x1xi32>
      %cst = arith.constant 0.000000e+00 : f32
      %28 = vector.broadcast %cst : f32 to vector<8x256xf32>
      %29 = arith.cmpf ogt, %21, %28 : vector<8x256xf32>
      %30 = vector.broadcast %27 : vector<8x1xi1> to vector<8x256xi1>
      %31 = arith.andi %29, %30 : vector<8x256xi1>
      %cst_14 = arith.constant 0.000000e+00 : f32
      %32 = vector.broadcast %cst_14 : f32 to vector<8x256xf32>
      %33 = arith.cmpf ogt, %21, %32 : vector<8x256xf32>
      %cst_15 = arith.constant 1.000000e+00 : f32
      %34 = vector.broadcast %cst_15 : f32 to vector<8x256xf32>
      %35 = arith.select %33, %21, %34 : vector<8x256xi1>, vector<8x256xf32>
      %36 = math.log %35 : vector<8x256xf32>
      %37 = arith.subf %36, %20 : vector<8x256xf32>
      %38 = arith.mulf %21, %37 : vector<8x256xf32>
      %cst_16 = arith.constant 0.000000e+00 : f32
      %39 = vector.broadcast %cst_16 : f32 to vector<8x256xf32>
      %40 = arith.select %31, %38, %39 : vector<8x256xi1>, vector<8x256xf32>
      %c0_17 = arith.constant 0 : index
      %c0_18 = arith.constant 0 : index
      %41 = vector.load %arg10[%c0_17, %c0_18] : memref<8x256xf32, #tpu.memory_space<vmem>>, vector<8x256xf32>
      %42 = vector.shape_cast %40 : vector<8x256xf32> to vector<1x8x256xf32>
      %cst_19 = arith.constant dense<0.000000e+00> : vector<8x256xf32>
      %43 = vector.multi_reduction <add>, %42, %cst_19 [0] : vector<1x8x256xf32> to vector<8x256xf32>
      %44 = arith.addf %41, %43 : vector<8x256xf32>
      %c0_20 = arith.constant 0 : index
      %c0_21 = arith.constant 0 : index
      %45 = vector.load %arg10[%c0_20, %c0_21] : memref<8x256xf32, #tpu.memory_space<vmem>>, vector<8x256xf32>
      tpu.vector_store %arg10[%c0_20, %c0_21], %44 {strides = array<i32>} : memref<8x256xf32, #tpu.memory_space<vmem>>, vector<8x256xf32>,
      %cst_22 = arith.constant dense<0.000000e+00> : vector<8xf32>
      %46 = vector.multi_reduction <add>, %20, %cst_22 [1] : vector<8x256xf32> to vector<8xf32>
      %47 = vector.shape_cast %46 : vector<8xf32> to vector<8x1xf32>
      %cst_23 = arith.constant dense<0.000000e+00> : vector<8xf32>
      %48 = vector.multi_reduction <add>, %21, %cst_23 [1] : vector<8x256xf32> to vector<8xf32>
      %49 = vector.shape_cast %48 : vector<8xf32> to vector<8x1xf32>
      %50 = arith.mulf %20, %20 : vector<8x256xf32>
      %cst_24 = arith.constant dense<0.000000e+00> : vector<8xf32>
      %51 = vector.multi_reduction <add>, %50, %cst_24 [1] : vector<8x256xf32> to vector<8xf32>
      %52 = vector.shape_cast %51 : vector<8xf32> to vector<8x1xf32>
      %53 = arith.mulf %21, %21 : vector<8x256xf32>
      %cst_25 = arith.constant dense<0.000000e+00> : vector<8xf32>
      %54 = vector.multi_reduction <add>, %53, %cst_25 [1] : vector<8x256xf32> to vector<8xf32>
      %55 = vector.shape_cast %54 : vector<8xf32> to vector<8x1xf32>
      %56 = arith.mulf %20, %21 : vector<8x256xf32>
      %cst_26 = arith.constant dense<0.000000e+00> : vector<8xf32>
      %57 = vector.multi_reduction <add>, %56, %cst_26 [1] : vector<8x256xf32> to vector<8xf32>
      %58 = vector.shape_cast %57 : vector<8xf32> to vector<8x1xf32>
      %cst_27 = arith.constant 3.906250e-03 : f32
      %59 = vector.broadcast %cst_27 : f32 to vector<8x1xf32>
      %60 = arith.mulf %47, %59 : vector<8x1xf32>
      %cst_28 = arith.constant 3.906250e-03 : f32
      %61 = vector.broadcast %cst_28 : f32 to vector<8x1xf32>
      %62 = arith.mulf %49, %61 : vector<8x1xf32>
      %cst_29 = arith.constant 3.906250e-03 : f32
      %63 = vector.broadcast %cst_29 : f32 to vector<8x1xf32>
      %64 = arith.mulf %58, %63 : vector<8x1xf32>
      %65 = arith.mulf %60, %62 : vector<8x1xf32>
      %66 = arith.subf %64, %65 : vector<8x1xf32>
      %cst_30 = arith.constant 3.906250e-03 : f32
      %67 = vector.broadcast %cst_30 : f32 to vector<8x1xf32>
      %68 = arith.mulf %52, %67 : vector<8x1xf32>
      %69 = arith.mulf %60, %60 : vector<8x1xf32>
      %70 = arith.subf %68, %69 : vector<8x1xf32>
      %cst_31 = arith.constant 3.906250e-03 : f32
      %71 = vector.broadcast %cst_31 : f32 to vector<8x1xf32>
      %72 = arith.mulf %55, %71 : vector<8x1xf32>
      %73 = arith.mulf %62, %62 : vector<8x1xf32>
      %74 = arith.subf %72, %73 : vector<8x1xf32>
      %75 = arith.mulf %70, %74 : vector<8x1xf32>
      %cst_32 = arith.constant 1.000000e+00 : f32
      %76 = vector.broadcast %cst_32 : f32 to vector<8x1xf32>
      %77 = arith.select %27, %75, %76 : vector<8x1xi1>, vector<8x1xf32>
      %cst_33 = arith.constant 0.000000e+00 : f32
      %78 = vector.broadcast %cst_33 : f32 to vector<8x1xf32>
      %79 = arith.subf %78, %66 : vector<8x1xf32>
      %80 = math.rsqrt %77 : vector<8x1xf32>
      %81 = arith.mulf %79, %80 : vector<8x1xf32>
      %cst_34 = arith.constant 0.000000e+00 : f32
      %82 = vector.broadcast %cst_34 : f32 to vector<8x1xf32>
      %83 = arith.select %27, %81, %82 : vector<8x1xi1>, vector<8x1xf32>
      %c0_35 = arith.constant 0 : index
      %c0_36 = arith.constant 0 : index
      %84 = vector.load %arg11[%c0_35, %c0_36] : memref<8x1xf32, #tpu.memory_space<vmem>>, vector<8x1xf32>
      %85 = vector.shape_cast %83 : vector<8x1xf32> to vector<1x8x1xf32>
      %cst_37 = arith.constant dense<0.000000e+00> : vector<8x1xf32>
      %86 = vector.multi_reduction <add>, %85, %cst_37 [0] : vector<1x8x1xf32> to vector<8x1xf32>
      %87 = arith.addf %84, %86 : vector<8x1xf32>
      %c0_38 = arith.constant 0 : index
      %c0_39 = arith.constant 0 : index
      %88 = vector.load %arg11[%c0_38, %c0_39] : memref<8x1xf32, #tpu.memory_space<vmem>>, vector<8x1xf32>
      tpu.vector_store %arg11[%c0_38, %c0_39], %87 {strides = array<i32>} : memref<8x1xf32, #tpu.memory_space<vmem>>, vector<8x1xf32>,
    } else {
    }
    %c0_i32_8 = arith.constant 0 : i32
    %17 = arith.cmpi eq, %arg1, %c0_i32_8 : i32
    %18 = arith.extui %17 : i1 to i32
    %c0_i32_9 = arith.constant 0 : i32
    %19 = arith.cmpi ne, %18, %c0_i32_9 : i32
    scf.if %19 {
      %c0 = arith.constant 0 : index
      %c0_10 = arith.constant 0 : index
      %20 = vector.load %arg6[%c0, %c0_10] : memref<2x8xf32, #tpu.memory_space<vmem>>, vector<2x8xf32>
      %c0_11 = arith.constant 0 : index
      %c0_12 = arith.constant 0 : index
      %21 = vector.load %arg7[%c0_11, %c0_12] : memref<2x1xi32, #tpu.memory_space<vmem>>, vector<2x1xi32>
      %22 = tpu.iota {dimensions = array<i32: 1>} : vector<2x8xi32>
      %23 = vector.broadcast %21 : vector<2x1xi32> to vector<2x8xi32>
      %24 = arith.cmpi eq, %22, %23 : vector<2x8xi32>
      %25 = arith.extui %24 : vector<2x8xi1> to vector<2x8xi32>
      %26 = arith.sitofp %25 : vector<2x8xi32> to vector<2x8xf32>
      %cst = arith.constant dense<0xFF800000> : vector<2xf32>
      %27 = vector.multi_reduction <maximumf>, %20, %cst [1] : vector<2x8xf32> to vector<2xf32>
      %28 = vector.shape_cast %27 : vector<2xf32> to vector<2x1xf32>
      %29 = vector.broadcast %28 : vector<2x1xf32> to vector<2x8xf32>
      %30 = arith.subf %20, %29 : vector<2x8xf32>
      %31 = math.exp %30 : vector<2x8xf32>
      %cst_13 = arith.constant dense<0.000000e+00> : vector<2xf32>
      %32 = vector.multi_reduction <add>, %31, %cst_13 [1] : vector<2x8xf32> to vector<2xf32>
      %33 = vector.shape_cast %32 : vector<2xf32> to vector<2x1xf32>
      %34 = math.log %33 : vector<2x1xf32>
      %35 = arith.addf %28, %34 : vector<2x1xf32>
      %36 = vector.broadcast %35 : vector<2x1xf32> to vector<2x8xf32>
      %37 = arith.subf %20, %36 : vector<2x8xf32>
      %38 = arith.mulf %26, %37 : vector<2x8xf32>
      %39 = vector.shape_cast %38 : vector<2x8xf32> to vector<1x2x8xf32>
      %cst_14 = arith.constant dense<0.000000e+00> : vector<1xf32>
      %40 = vector.multi_reduction <add>, %39, %cst_14 [1, 2] : vector<1x2x8xf32> to vector<1xf32>
      %41 = vector.shape_cast %40 : vector<1xf32> to vector<1x1x1xf32>
      %42 = vector.extract %41[0, 0, 0] : f32 from vector<1x1x1xf32>
      %cst_15 = arith.constant 0.000000e+00 : f32
      %43 = arith.subf %cst_15, %42 : f32
      %cst_16 = arith.constant 2.000000e+00 : f32
      %44 = arith.divf %43, %cst_16 : f32
      %c0_17 = arith.constant 0 : index
      %c0_18 = arith.constant 0 : index
      %45 = vector.load %arg9[%c0_17, %c0_18] : memref<8x256xf32, #tpu.memory_space<vmem>>, vector<8x256xf32>
      %46 = vector.shape_cast %45 : vector<8x256xf32> to vector<1x8x256xf32>
      %cst_19 = arith.constant dense<0.000000e+00> : vector<1xf32>
      %47 = vector.multi_reduction <add>, %46, %cst_19 [1, 2] : vector<1x8x256xf32> to vector<1xf32>
      %48 = vector.shape_cast %47 : vector<1xf32> to vector<1x1x1xf32>
      %49 = vector.extract %48[0, 0, 0] : f32 from vector<1x1x1xf32>
      %c0_20 = arith.constant 0 : index
      %c0_21 = arith.constant 0 : index
      %50 = vector.load %arg10[%c0_20, %c0_21] : memref<8x256xf32, #tpu.memory_space<vmem>>, vector<8x256xf32>
      %51 = vector.shape_cast %50 : vector<8x256xf32> to vector<1x8x256xf32>
      %cst_22 = arith.constant dense<0.000000e+00> : vector<1xf32>
      %52 = vector.multi_reduction <add>, %51, %cst_22 [1, 2] : vector<1x8x256xf32> to vector<1xf32>
      %53 = vector.shape_cast %52 : vector<1xf32> to vector<1x1x1xf32>
      %54 = vector.extract %53[0, 0, 0] : f32 from vector<1x1x1xf32>
      %c0_23 = arith.constant 0 : index
      %c0_24 = arith.constant 0 : index
      %55 = vector.load %arg11[%c0_23, %c0_24] : memref<8x1xf32, #tpu.memory_space<vmem>>, vector<8x1xf32>
      %56 = vector.shape_cast %55 : vector<8x1xf32> to vector<1x8x1xf32>
      %cst_25 = arith.constant dense<0.000000e+00> : vector<1xf32>
      %57 = vector.multi_reduction <add>, %56, %cst_25 [1, 2] : vector<1x8x1xf32> to vector<1xf32>
      %58 = vector.shape_cast %57 : vector<1xf32> to vector<1x1x1xf32>
      %59 = vector.extract %58[0, 0, 0] : f32 from vector<1x1x1xf32>
      %c0_i32_26 = arith.constant 0 : i32
      %60 = arith.cmpi eq, %arg0, %c0_i32_26 : i32
      %cst_27 = arith.constant 0.000000e+00 : f32
      %61 = arith.select %60, %44, %cst_27 : f32
      %62 = tpu.iota {dimensions = array<i32: 1>} : vector<8x128xi32>
      %c0_i32_28 = arith.constant 0 : i32
      %63 = vector.broadcast %c0_i32_28 : i32 to vector<8x128xi32>
      %64 = arith.cmpi eq, %62, %63 : vector<8x128xi32>
      %cst_29 = arith.constant 0.000000e+00 : f32
      %65 = vector.broadcast %49 : f32 to vector<8x128xf32>
      %66 = vector.broadcast %cst_29 : f32 to vector<8x128xf32>
      %67 = arith.select %64, %65, %66 : vector<8x128xi1>, vector<8x128xf32>
      %c1_i32_30 = arith.constant 1 : i32
      %68 = vector.broadcast %c1_i32_30 : i32 to vector<8x128xi32>
      %69 = arith.cmpi eq, %62, %68 : vector<8x128xi32>
      %cst_31 = arith.constant 0.000000e+00 : f32
      %70 = vector.broadcast %54 : f32 to vector<8x128xf32>
      %71 = vector.broadcast %cst_31 : f32 to vector<8x128xf32>
      %72 = arith.select %69, %70, %71 : vector<8x128xi1>, vector<8x128xf32>
      %73 = arith.addf %67, %72 : vector<8x128xf32>
      %c2_i32 = arith.constant 2 : i32
      %74 = vector.broadcast %c2_i32 : i32 to vector<8x128xi32>
      %75 = arith.cmpi eq, %62, %74 : vector<8x128xi32>
      %cst_32 = arith.constant 0.000000e+00 : f32
      %76 = vector.broadcast %59 : f32 to vector<8x128xf32>
      %77 = vector.broadcast %cst_32 : f32 to vector<8x128xf32>
      %78 = arith.select %75, %76, %77 : vector<8x128xi1>, vector<8x128xf32>
      %79 = arith.addf %73, %78 : vector<8x128xf32>
      %c3_i32 = arith.constant 3 : i32
      %80 = vector.broadcast %c3_i32 : i32 to vector<8x128xi32>
      %81 = arith.cmpi eq, %62, %80 : vector<8x128xi32>
      %cst_33 = arith.constant 0.000000e+00 : f32
      %82 = vector.broadcast %61 : f32 to vector<8x128xf32>
      %83 = vector.broadcast %cst_33 : f32 to vector<8x128xf32>
      %84 = arith.select %81, %82, %83 : vector<8x128xi1>, vector<8x128xf32>
      %85 = arith.addf %79, %84 : vector<8x128xf32>
      %c0_34 = arith.constant 0 : index
      %c0_35 = arith.constant 0 : index
      %86 = vector.load %arg8[%c0_34, %c0_35] : memref<8x128xf32, #tpu.memory_space<vmem>>, vector<8x128xf32>
      tpu.vector_store %arg8[%c0_34, %c0_35], %85 {strides = array<i32>} : memref<8x128xf32, #tpu.memory_space<vmem>>, vector<8x128xf32>,
    } else {
    }
    return
  }
  func.func @transform_0(%arg0: i32, %arg1: i32) -> (i32, i32) {
    %c1_i32 = arith.constant 1 : i32
    %0 = arith.muli %arg0, %c1_i32 : i32
    %c0_i32 = arith.constant 0 : i32
    %1 = arith.minsi %arg1, %c0_i32 : i32
    %2 = arith.addi %0, %1 : i32
    %c0_i32_0 = arith.constant 0 : i32
    %3 = arith.minsi %2, %c0_i32_0 : i32
    %c0_i32_1 = arith.constant 0 : i32
    %c0_i32_2 = arith.constant 0 : i32
    return %3, %c0_i32_1 : i32, i32
  }
  func.func @transform_1(%arg0: i32, %arg1: i32) -> (i32, i32) {
    %c1_i32 = arith.constant 1 : i32
    %0 = arith.muli %arg0, %c1_i32 : i32
    %c0_i32 = arith.constant 0 : i32
    %1 = arith.minsi %arg1, %c0_i32 : i32
    %2 = arith.addi %0, %1 : i32
    %c0_i32_0 = arith.constant 0 : i32
    %3 = arith.minsi %2, %c0_i32_0 : i32
    %c0_i32_1 = arith.constant 0 : i32
    %c0_i32_2 = arith.constant 0 : i32
    return %3, %c0_i32_1 : i32, i32
  }
  func.func @transform_2(%arg0: i32, %arg1: i32) -> (i32, i32) {
    %c1_i32 = arith.constant 1 : i32
    %0 = arith.muli %arg0, %c1_i32 : i32
    %c0_i32 = arith.constant 0 : i32
    %1 = arith.minsi %arg1, %c0_i32 : i32
    %2 = arith.addi %0, %1 : i32
    %c0_i32_0 = arith.constant 0 : i32
    %3 = arith.minsi %2, %c0_i32_0 : i32
    %c0_i32_1 = arith.constant 0 : i32
    %c0_i32_2 = arith.constant 0 : i32
    return %3, %c0_i32_1 : i32, i32
  }
  func.func @transform_3(%arg0: i32, %arg1: i32) -> (i32, i32) {
    %c1_i32 = arith.constant 1 : i32
    %0 = arith.muli %arg0, %c1_i32 : i32
    %c0_i32 = arith.constant 0 : i32
    %1 = arith.minsi %arg1, %c0_i32 : i32
    %2 = arith.addi %0, %1 : i32
    %c0_i32_0 = arith.constant 0 : i32
    %3 = arith.minsi %2, %c0_i32_0 : i32
    %c0_i32_1 = arith.constant 0 : i32
    %c0_i32_2 = arith.constant 0 : i32
    return %3, %c0_i32_1 : i32, i32
  }
  func.func @transform_4(%arg0: i32, %arg1: i32) -> (i32, i32) {
    %c0_i32 = arith.constant 0 : i32
    %c0_i32_0 = arith.constant 0 : i32
    %c0_i32_1 = arith.constant 0 : i32
    return %c0_i32, %c0_i32_0 : i32, i32
  }
  func.func @transform_5(%arg0: i32, %arg1: i32) -> (i32, i32) {
    %c0_i32 = arith.constant 0 : i32
    %c0_i32_0 = arith.constant 0 : i32
    %c0_i32_1 = arith.constant 0 : i32
    return %c0_i32, %c0_i32_0 : i32, i32
  }
  func.func @transform_6(%arg0: i32, %arg1: i32) -> (i32, i32) {
    %c0_i32 = arith.constant 0 : i32
    %c0_i32_0 = arith.constant 0 : i32
    return %arg0, %c0_i32 : i32, i32
  }
}

</mosaic_0001>

<bundles_post_ra>
// kernel: tpu_custom_call.1
= control target key start
LH: loop header
LB: loop body
LE: loop exit
PB: predicated region body
PF: predicated region fallthrough
CT: control target
= control target key end

     0   :  { %s1594_s0 = inlined_call_operand.hbm [shape: f32[8,256], index: 0, kind: input, shape index: {}]   ;;  %s1595_s1 = inlined_call_operand.hbm [shape: f32[8,256], index: 1, kind: input, shape index: {}]   ;;  %s1596_s2 = inlined_call_operand.hbm [shape: f32[8,256], index: 2, kind: input, shape index: {}]   ;;  %s1597_s3 = inlined_call_operand.hbm [shape: f32[8,256], index: 3, kind: input, shape index: {}]   ;;  %s1598_s4 = inlined_call_operand.vmem [shape: f32[2,8], index: 4, kind: input, shape index: {}]   ;;  %s1599_s5 = inlined_call_operand.vmem [shape: s32[2,1], index: 5, kind: input, shape index: {}]   ;;  %s1600_s6 = inlined_call_operand.hbm [shape: f32[16,128], index: 6, kind: output, shape index: {}]  }
   0x1   :  { %1608 = sst [smem:[#allocation22_spill]] %s1595_s1 }
   0x2   :  { %11 = vsyncpa [#allocation6], 0 }
   0x3   :  { %13 = vsyncpa [#allocation6 + $0x1], 0 }
   0x4   :  { %14 = vsyncpa [#allocation9], 0 }
   0x5   :  { %16 = vsyncpa [#allocation9 + $0x1], 0 }
   0x6   :  { %17 = vsyncpa [#allocation12], 0 }
   0x7   :  { %19 = vsyncpa [#allocation12 + $0x1], 0 }
   0x8   :  { %20 = vsyncpa [#allocation7], 0 }
   0x9   :  { %22 = vsyncpa [#allocation7 + $0x1], 0  ;;  %s1271_s21 = smov 0   ;;  %s1273_s22 = smov 0  }
   0xa   :  { %s1275_s23 = smov 0   ;;  %s1277_s24 = smov 0  }
   0xb   :  { %s1279_s25 = smov 0   ;;  %s1281_s26 = smov 0  }
   0xc   :  { %s1283_s27 = smov 0   ;;  %s1285_s28 = smov 0  }
   0xd LB: > { %1609 = sst [smem:[#allocation18_spill]] %s1207_s23  ;;  %s1310_s29 = sadd.s32 4294967295, %s1227_s28   ;;  %s1227_s28 = sphi %s1285_s28, %s28_s28   ;;  %s1223_s27 = sphi %s1283_s27, %s1634_s27   ;;  %s1219_s26 = sphi %s1281_s26, %s1633_s26   ;;  %s1215_s25 = sphi %s1279_s25, %s1584_s25   ;;  %s1211_s24 = sphi %s1277_s24, %s1637_s24   ;;  %s1207_s23 = sphi %s1275_s23, %s1632_s23   ;;  %s1203_s22 = sphi %s1273_s22, %s1636_s22   ;;  %s1199_s21 = sphi %s1271_s21, %s1635_s21  }
   0xe   : > { %1610 = sst [smem:[#allocation19_spill]] %s1223_s27  ;;  %s840_s30 = sadd.s32 4294967294, %s1227_s28  }
   0xf   : > { %s40_s7 = sadd.s32 1, %s1223_s27  ;;  %p1196_p1 = scmp.ne.s32.totalorder %s1215_s25, 0 }
  0x10   : > { %p42_p0 = scmp.ge.s32.totalorder %s40_s7, 2  ;;  %p65_p2 = scmp.eq.s32.totalorder %s1227_s28, 0 }
  0x11   : > { %p70_p3 = scmp.ne.s32.totalorder %s1215_s25, %s1211_s24  ;;  %p71_p5 = scmp.eq.s32.totalorder %s1310_s29, 0 }
  0x12   : > { %s1639_s7 = smov (%p42_p0, %s40_s7), 0  ;;  %p1319_p4 = por %p1196_p1, %p65_p2 }
  0x13   : > { %1611 = sst [smem:[#allocation20_spill]] %s1639_s7  ;;  %p1324_p6 = por %p71_p5, %p70_p3 }
  0x14   : > { %s230_s10 = ssub.s32 %s1223_s27, %s1639_s7  ;;  %s233_s11 = sadd.s32 1, %s1207_s23 }
  0x15   : > { %s1613_s9 = scalar_select %p1324_p6, 1, 0 }
  0x16   : > { %p231_p7 = scmp.eq.s32.totalorder %s230_s10, 0  ;;  %p243_p8 = scmp.ne.s32.totalorder %s1207_s23, %s1203_s22 }
  0x17   : > { %p244_p9 = scmp.eq.s32.totalorder %s1310_s29, 1  ;;  %p249_p10 = scmp.ne.s32.totalorder %s1203_s22, %s1199_s21 }
  0x18   : > { %s1332_s12 = scalar_select %p231_p7, %s1207_s23, %s233_s11  }
  0x19   : > { %p250_p11 = scmp.eq.s32.totalorder %s840_s30, 1  ;;  %p1339_p12 = por %p244_p9, %p243_p8 }
  0x1a   : > { %1614 = sst [smem:[#allocation21_spill]] %s1332_s12  ;;  %p908_p1 = scmp.lt.s32.totalorder %s1227_s28, 2 }
  0x1b   : > { %s1615_s13 = scalar_select %p1339_p12, 1, 0 }
  0x1c   : > { %p1344_p0 = por %p250_p11, %p249_p10  ;;  %p1351_p2 = pnand %p908_p1, %p1319_p4 }
  0x1d   : > { %s300_s16 = sand.u32 1, %s1227_s28   ;;  %s1229_s17 = smov [#allocation8]  }
  0x1e   : > { %s1616_s14 = scalar_select %p1344_p0, 1, 0 }
  0x1f   : > { %s1617_s15 = scalar_select %p1351_p2, 1, 0 }
  0x20   : > { %s317_s18 = sshll.u32 %s1229_s17, 4  ;;  %s1357_s19 = scalar_lea.sflag [#allocation9], %s300_s16  ;;  %s318_s18 = int_to_ptr.vmem [resolvable:$true] %s317_s18 }
  0x21   : > { %s1618_s1 = sld [smem:[#allocation22_spill]]  ;;  %p1367_p4 = pneg %p1351_p2 }
  0x27   : > { %s996_s30 = scalar_lea.hbm %s1618_s1, 256 }
  0x28   : > { %p997_p5 = scmp.ne.s32.totalorder %s1618_s1, %s996_s30  ;;  %p1003_p9 = scmp.lt.u32.totalorder %s996_s30, %s996_s30 }
  0x29   : > { %p1005_p10 = scmp.lt.u32.totalorder %s996_s30, %s1618_s1 }
  0x2a   : > { %p999_p7 = pnand %p1367_p4, %p997_p5 }
  0x2b   : > { %p1006_p11 = por %p1005_p10, %p1003_p9 }
  0x2c   : > { %p1000_p8 = pneg %p999_p7 }
  0x2e   : > { %p1007_p1 = pnand %p1006_p11, %p1000_p8 }
  0x30   : > { %1010 = shalt.err (!%p1007_p1)
}
  0x31   : > { %s1011_s20 = scalar_lea.vmem %s318_s18, 256  ;;  %s1018_s24 = scalar_lea.vmem %s318_s18, 512 }
  0x32   : > { %p1012_p13 = scmp.ne.s32.totalorder %s318_s18, %s1011_s20  ;;  %p1019_p12 = scmp.lt.s32.totalorder %s318_s18, %s318_s18 }
  0x33   : > { %p1020_p6 = scmp.lt.s32.totalorder %s1018_s24, %s1011_s20 }
  0x34   : > { %p1014_p3 = pnand %p1012_p13, %p1367_p4 }
  0x35   : > { %p1021_p2 = por %p1020_p6, %p1019_p12 }
  0x36   : > { %p1015_p0 = pneg %p1014_p3 }
  0x38   : > { %p1022_p5 = pnand %p1021_p2, %p1015_p0 }
  0x3a   : > { %1025 = shalt.err (!%p1022_p5)
}
  0x3b   : > { %p1620_p7 = scmp.ne.s32.totalorder %s1617_s15, 0  ;;  %p370_p8 = scmp.lt.s32.totalorder %s1227_s28, 3 }
  0x3c   : > { %p1621_p9 = scmp.ge.s32.totalorder %s1227_s28, 1  ;;  %s1230_s16 = smov [#allocation5]  }
  0x3d   : > { %897 = dma.hbm_to_vmem [thread:$0]  (!%p1620_p7), %s1618_s1, 256, %s318_s18, %s1357_s19  }
  0x3e   : > { %p1387_p13 = pnand %p1621_p9, %p370_p8  ;;  %s293_s17 = sshll.u32 %s1230_s16, 4  ;;  %s294_s17 = int_to_ptr.vmem [resolvable:$true] %s293_s17 }
  0x3f   : > { %s1026_s7 = scalar_lea.hbm %s1594_s0, 256 }
  0x40   : > { %s1622_s11 = scalar_select %p1387_p13, 1, 0 }
  0x41   : > { %p1027_p6 = scmp.ne.s32.totalorder %s1594_s0, %s1026_s7  ;;  %p1033_p2 = scmp.lt.u32.totalorder %s1026_s7, %s1026_s7 }
  0x42   : > { %p1035_p3 = scmp.lt.u32.totalorder %s1026_s7, %s1594_s0 }
  0x43   : > { %p1029_p12 = pnand %p1027_p6, %p1367_p4 }
  0x44   : > { %p1036_p10 = por %p1035_p3, %p1033_p2 }
  0x45   : > { %p1030_p0 = pneg %p1029_p12 }
  0x47   : > { %p1037_p11 = pnand %p1036_p10, %p1030_p0 }
  0x49   : > { %1040 = shalt.err (!%p1037_p11)
}
  0x4a   : > { %s1041_s30 = scalar_lea.vmem %s294_s17, 256  ;;  %s1048_s16 = scalar_lea.vmem %s294_s17, 512 }
  0x4b   : > { %p1042_p1 = scmp.ne.s32.totalorder %s294_s17, %s1041_s30  ;;  %p1049_p9 = scmp.lt.s32.totalorder %s294_s17, %s294_s17 }
  0x4c   : > { %p1050_p13 = scmp.lt.s32.totalorder %s1048_s16, %s1041_s30 }
  0x4d   : > { %p1044_p5 = pnand %p1042_p1, %p1367_p4 }
  0x4e   : > { %p1051_p7 = por %p1050_p13, %p1049_p9 }
  0x4f   : > { %p1045_p8 = pneg %p1044_p5 }
  0x51   : > { %p1052_p6 = pnand %p1051_p7, %p1045_p8 }
  0x53   : > { %1055 = shalt.err (!%p1052_p6)
}
  0x54   : > { %p1623_p12 = scmp.ne.s32.totalorder %s1617_s15, 0  ;;  %s1231_s7 = smov [#allocation10]  }
  0x55   : > { %s341_s20 = sshll.u32 %s1231_s7, 4  ;;  %s1056_s10 = scalar_lea.hbm %s1596_s2, 256  ;;  %s342_s20 = int_to_ptr.vmem [resolvable:$true] %s341_s20 }
  0x56   : > { %894 = dma.hbm_to_vmem [thread:$0]  (!%p1623_p12), %s1594_s0, 256, %s294_s17, [#allocation6]  }
  0x57   : > { %p1057_p13 = scmp.ne.s32.totalorder %s1596_s2, %s1056_s10  ;;  %p1063_p2 = scmp.lt.u32.totalorder %s1056_s10, %s1056_s10 }
  0x58   : > { %p1065_p3 = scmp.lt.u32.totalorder %s1056_s10, %s1596_s2 }
  0x59   : > { %p1059_p7 = pnand %p1057_p13, %p1367_p4 }
  0x5a   : > { %p1066_p10 = por %p1065_p3, %p1063_p2 }
  0x5b   : > { %p1060_p0 = pneg %p1059_p7 }
  0x5d   : > { %p1067_p11 = pnand %p1066_p10, %p1060_p0 }
  0x5f   : > { %1070 = shalt.err (!%p1067_p11)
}
  0x60   : > { %s1071_s17 = scalar_lea.vmem %s342_s20, 256  ;;  %s1078_s27 = scalar_lea.vmem %s342_s20, 512 }
  0x61   : > { %p1072_p1 = scmp.ne.s32.totalorder %s342_s20, %s1071_s17  ;;  %p1079_p9 = scmp.lt.s32.totalorder %s342_s20, %s342_s20 }
  0x62   : > { %p1080_p6 = scmp.lt.s32.totalorder %s1078_s27, %s1071_s17 }
  0x63   : > { %p1074_p5 = pnand %p1072_p1, %p1367_p4 }
  0x64   : > { %p1081_p12 = por %p1080_p6, %p1079_p9 }
  0x65   : > { %p1075_p8 = pneg %p1074_p5 }
  0x67   : > { %p1082_p13 = pnand %p1081_p12, %p1075_p8 }
  0x69   : > { %1085 = shalt.err (!%p1082_p13)
}
  0x6a   : > { %p1624_p7 = scmp.ne.s32.totalorder %s1617_s15, 0  ;;  %s1232_s12 = smov [#allocation11]  }
  0x6b   : > { %s365_s7 = sshll.u32 %s1232_s12, 4  ;;  %s1086_s10 = scalar_lea.hbm %s1597_s3, 256  ;;  %s366_s7 = int_to_ptr.vmem [resolvable:$true] %s365_s7 }
  0x6c   : > { %900 = dma.hbm_to_vmem [thread:$0]  (!%p1624_p7), %s1596_s2, 256, %s342_s20, %s1357_s19  }
  0x6d   : > { %p1087_p12 = scmp.ne.s32.totalorder %s1597_s3, %s1086_s10  ;;  %p1093_p3 = scmp.lt.u32.totalorder %s1086_s10, %s1086_s10 }
  0x6e   : > { %p1095_p10 = scmp.lt.u32.totalorder %s1086_s10, %s1597_s3 }
  0x6f   : > { %p1089_p0 = pnand %p1087_p12, %p1367_p4 }
  0x70   : > { %p1096_p11 = por %p1095_p10, %p1093_p3 }
  0x71   : > { %p1090_p2 = pneg %p1089_p0 }
  0x73   : > { %p1097_p1 = pnand %p1096_p11, %p1090_p2 }
  0x75   : > { %1100 = shalt.err (!%p1097_p1)
}
  0x76   : > { %s1101_s19 = scalar_lea.vmem %s366_s7, 256  ;;  %s1108_s20 = scalar_lea.vmem %s366_s7, 512 }
  0x77   : > { %p1102_p5 = scmp.ne.s32.totalorder %s366_s7, %s1101_s19  ;;  %p1109_p6 = scmp.lt.s32.totalorder %s366_s7, %s366_s7 }
  0x78   : > { %p1110_p13 = scmp.lt.s32.totalorder %s1108_s20, %s1101_s19 }
  0x79   : > { %p1104_p8 = pnand %p1102_p5, %p1367_p4 }
  0x7a   : > { %p1111_p7 = por %p1110_p13, %p1109_p6 }
  0x7b   : > { %p1105_p9 = pneg %p1104_p8 }
  0x7d   : > { %p1112_p12 = pnand %p1111_p7, %p1105_p9 }
  0x7f   : > { %1115 = shalt.err (!%p1112_p12)
}
  0x80   : > { %p1625_p0 = scmp.ne.s32.totalorder %s1617_s15, 0  ;;  %p1626_p2 = scmp.ne.s32.totalorder %s1622_s11, 0 }
  0x81   : > { %s376_s8 = sand.u32 (!%p1626_p2), 1, %s1215_s25   ;;  %p1627_p4 = scmp.ne.s32.totalorder (!%p1626_p2), %s1613_s9, 0 }
  0x82   : > { %903 = dma.hbm_to_vmem [thread:$0]  (!%p1625_p0), %s1597_s3, 256, %s366_s7, [#allocation12]  }
  0x83   : > { %374 = sbr.rel (%p1626_p2) target bundleno = 871 (0x367), region = 44  ;;  %s1449_s12 = sshll.u32 (!%p1626_p2), %s376_s8, 4 }
  0x84   : > { %s377_s24 = scalar_lea.sflag (!%p1626_p2), [#allocation6], %s376_s8  ;;  %s380_s18 = scalar_lea.vmem (!%p1626_p2), [#allocation5], %s1449_s12 }
  0x8a   : > { %1181 = dma.done.wait (%p1627_p4), %s377_s24, 256  }
  0x8b   : > { %1183 = vsyncadd (%p1627_p4), %s377_s24, 4294967040  ;;  %s385_s15 = sand.u32 1, %s1310_s29   ;;  %s389_s11 = scalar_lea.vmem [#allocation8], %s1449_s12 }
  0x8c   : > { %s386_s7 = scalar_lea.sflag [#allocation9], %s385_s15 }
  0x8d   : > { %1185 = dma.done.wait (%p1627_p4), %s386_s7, 512  }
  0x8e   : > { %1187 = vsyncadd (%p1627_p4), %s386_s7, 4294966784  ;;  %s398_s10 = scalar_lea.vmem [#allocation10], %s1449_s12  ;;  %s404_s30 = scalar_lea.sflag [#allocation12], %s376_s8 }
  0x8f   : > { %s407_s16 = scalar_lea.vmem [#allocation11], %s1449_s12 }
  0x90   : > { %1189 = dma.done.wait (%p1627_p4), %s404_s30, 256  }
  0x91   : > { %1191 = vsyncadd (%p1627_p4), %s404_s30, 4294967040  ;;  %s448_s29 = sand.u32 1, %s1203_s22   ;;  %p483_p7 = scmp.lt.s32.totalorder %s1219_s26, 1  ;;  %vm479_vm0 = vcmask 7168   ;;  %v1233_v0 = vmov 0.0  }
  0x92   : > { %s1472_s17 = sshll.u32 %s448_s29, 3  ;;  %475 = vst [vmem:[#allocation2] sm:$0xff] %v1233_v0  ;;  %476 = vst [vmem:[#allocation2 + $0x8] sm:$0xff] %v1233_v0  ;;  %v514_v1 = vld [vmem:[%s398_s10] sm:$0xff] (%p483_p7)  ;;  %v515_v2 = vld [vmem:[%s398_s10 + $0x8] sm:$0xff] (%p483_p7)  ;;  %v492_v4 = vlaneseq (%p483_p7)  ;;  %s862_s27 = sshll.u32 (%p483_p7), %s1219_s26, 3 }
  0x93   : > { %477 = vst [vmem:[#allocation3] sm:$0xff] %v1233_v0  ;;  %478 = vst [vmem:[#allocation3 + $0x8] sm:$0xff] %v1233_v0  ;;  %s450_s9 = scalar_lea.vmem [#allocation13], %s1472_s17  ;;  %487 = sbr.rel (!%p483_p7) target bundleno = 321 (0x141), region = 68  ;;  %v516_v3 = vld [vmem:[%s407_s16] sm:$0xff] (%p483_p7)  ;;  %v517_v5 = vld [vmem:[%s407_s16 + $0x8] sm:$0xff] (%p483_p7)  ;;  %v542_v6 = vadd.f32 (%p483_p7), %v515_v2, %v514_v1  ;;  %v495_v7 = vstv (%p483_p7), %s862_s27  ;;  %v548_v8 = vmul.f32 (%p483_p7), %v514_v1, %v514_v1  ;;  %v549_v14 = vmul.f32 (%p483_p7), %v515_v2, %v515_v2 }
  0x94   : > { %480 = vst.msk [vmem:[#allocation4] sm:$0xff] %vm479_vm0, %v1233_v0  ;;  %vm518_vm1 = vcmp.gt.f32.partialorder (%p483_p7), %v516_v3, 0.0  ;;  %vm519_vm2 = vcmp.gt.f32.partialorder (%p483_p7), %v517_v5, 0.0  ;;  %v488_v10 = vld [vmem:[%s380_s18] sm:$0xff] (%p483_p7)  ;;  %v489_v11 = vld [vmem:[%s380_s18 + $0x8] sm:$0xff] (%p483_p7)  ;;  %v493_v13 = vshrl.u32 (%p483_p7), %v492_v4, 7  ;;  %v545_v18 = vadd.f32 (%p483_p7), %v517_v5, %v516_v3 }
  0x95   : > { %v522_v9 = vsel (%p483_p7), %vm518_vm1, %v516_v3, 1.0  ;;  %v490_v12 = vld [vmem:[%s389_s11] sm:$0xff] (%p483_p7)  ;;  %v523_v15 = vsel (%p483_p7), %vm519_vm2, %v517_v5, 1.0  ;;  %543 = vadd.xlane.f32.xlu0 (%p483_p7), %v542_v6  ;;  %v491_v16 = vld [vmem:[%s389_s11 + $0x8] sm:$0xff] (%p483_p7)  ;;  %v550_v21 = vadd.f32 (%p483_p7), %v549_v14, %v548_v8  ;;  %v553_v24 = vmul.f32 (%p483_p7), %v516_v3, %v516_v3 }
  0x96   : > { %984 = vlog2.f32 (%p483_p7), %v522_v9  ;;  %v498_v17 = vsub.f32 (%p483_p7), %v488_v10, %v490_v12  ;;  %v1492_v19 = vadd.s32 (%p483_p7), %v495_v7, %v493_v13  ;;  %v499_v20 = vsub.f32 (%p483_p7), %v489_v11, %v491_v16 }
  0x97   : > { %986 = vlog2.f32 (%p483_p7), %v523_v15  ;;  %v554_v25 = vmul.f32 (%p483_p7), %v517_v5, %v517_v5  ;;  %v558_v26 = vmul.f32 (%p483_p7), %v516_v3, %v514_v1  ;;  %551 = vadd.xlane.f32.xlu1 (%p483_p7), %v550_v21  ;;  %v559_v29 = vmul.f32 (%p483_p7), %v517_v5, %v515_v2 }
  0x98   : > { %v500_v22 = vmul.f32 (%p483_p7), %v498_v17, %v498_v17  ;;  %vm497_vm3 = vcmp.lt.s32.totalorder (%p483_p7), %v1492_v19, 8  ;;  %v501_v27 = vmul.f32 (%p483_p7), %v499_v20, %v499_v20 }
  0x99   : > { %v506_v23 = vld [vmem:[#allocation2] sm:$0xff] (%p483_p7)  ;;  %v507_v28 = vld [vmem:[#allocation2 + $0x8] sm:$0xff] (%p483_p7)  ;;  %546 = vadd.xlane.f32.xlu0 (%p483_p7), %v545_v18  ;;  %v555_v31 = vadd.f32 (%p483_p7), %v554_v25, %v553_v24  ;;  %v560_v34 = vadd.f32 (%p483_p7), %v559_v29, %v558_v26  ;;  %vm520_vm4 = vmand (%p483_p7), %vm518_vm1, %vm497_vm3 }
  0x9a   : > { %v504_v30 = vsel %vm497_vm3, %v500_v22, 0.0  ;;  %v505_v32 = vsel %vm497_vm3, %v501_v27, 0.0  ;;  %v534_v42 = vld [vmem:[#allocation3] sm:$0xff]  ;;  %vm521_vm5 = vmand %vm519_vm2, %vm497_vm3  ;;  %v535_v45 = vld [vmem:[#allocation3 + $0x8] sm:$0xff] }
  0x9b   : > { %v510_v33 = vadd.f32 %v506_v23, %v504_v30  ;;  %v511_v35 = vadd.f32 %v507_v28, %v505_v32  ;;  %556 = vadd.xlane.f32.xlu1 %v555_v31  ;;  %v580_v7 = vld [vmem:[#allocation4] sm:$0xff] }
  0x9d   : > { %512 = vst [vmem:[#allocation2] sm:$0xff] %v510_v33  ;;  %513 = vst [vmem:[#allocation2 + $0x8] sm:$0xff] %v511_v35  ;;  %561 = vadd.xlane.f32.xlu0 %v560_v34 }
  0xa0   : > { %v985_v36 = vpop.eup %984 }
  0xa1   : > { %v987_v37 = vpop.eup %986  ;;  %v525_v38 = vmul.f32 0.6931472, %v985_v36 }
  0xa2   : > { %v527_v39 = vmul.f32 0.6931472, %v987_v37 }
  0xa3   : > { %v528_v40 = vsub.f32 %v525_v38, %v514_v1 }
  0xa4   : > { %v529_v41 = vsub.f32 %v527_v39, %v515_v2 }
  0xa5   : > { %v530_v43 = vmul.f32 %v528_v40, %v516_v3 }
  0xa6   : > { %v531_v44 = vmul.f32 %v529_v41, %v517_v5 }
  0xa7   : > { %v532_v46 = vsel %vm520_vm4, %v530_v43, 0.0 }
  0xa8   : > { %v533_v47 = vsel %vm521_vm5, %v531_v44, 0.0  ;;  %v538_v48 = vadd.f32 %v534_v42, %v532_v46 }
  0xa9   : > { %v539_v49 = vadd.f32 %v535_v45, %v533_v47 }
  0xaa   : > { %540 = vst [vmem:[#allocation3] sm:$0xff] %v538_v48 }
  0xab   : > { %541 = vst [vmem:[#allocation3 + $0x8] sm:$0xff] %v539_v49 }
 0x122   : > { %v544_v50 = vpop.xlane.xlu0 %543 }
 0x123   : > { %v563_v51 = vmul.f32 0.00390625, %v544_v50 }
 0x124   : > { %v552_v52 = vpop.xlane.xlu1 %551 }
 0x125   : > { %v569_v55 = vmul.f32 %v563_v51, %v563_v51  ;;  %v568_v56 = vmul.f32 0.00390625, %v552_v52 }
 0x126   : > { %v547_v53 = vpop.xlane.xlu0 %546 }
 0x127   : > { %v564_v54 = vmul.f32 0.00390625, %v547_v53  ;;  %v570_v60 = vsub.f32 %v568_v56, %v569_v55 }
 0x128   : > { %v557_v58 = vpop.xlane.xlu1 %556 }
 0x129   : > { %v572_v57 = vmul.f32 %v564_v54, %v564_v54  ;;  %v571_v59 = vmul.f32 0.00390625, %v557_v58  ;;  %v566_v3 = vmul.f32 %v564_v54, %v563_v51 }
 0x12a   : > { %v562_v63 = vpop.xlane.xlu0 %561 }
 0x12b   : > { %v573_v61 = vsub.f32 %v571_v59, %v572_v57  ;;  %v565_v2 = vmul.f32 0.00390625, %v562_v63 }
 0x12d   : > { %v574_v62 = vmul.f32 %v573_v61, %v570_v60  ;;  %v567_v4 = vsub.f32 %v565_v2, %v566_v3 }
 0x12f   : > { %v575_v1 = vsel %vm497_vm3, %v574_v62, 1.0  ;;  %v576_v5 = vsub.f32 0.0, %v567_v4 }
 0x130   : > { %988 = vrsqrt.f32 %v575_v1 }
 0x13a   : > { %v989_v6 = vpop.eup %988 }
 0x13b   : > { %v578_v8 = vmul.f32 %v989_v6, %v576_v5 }
 0x13d   : > { %v579_v9 = vsel %vm497_vm3, %v578_v8, 0.0 }
 0x13e   : > { %v582_v10 = vadd.f32 %v580_v7, %v579_v9 }
 0x140   : > { %584 = vst.msk [vmem:[#allocation4] sm:$0xff] %vm479_vm0, %v582_v10 }
 0x141 PF: > { %v588_v11 = vld [vmem:[%s1598_s4] sm:$0x3]  ;;  %vm598_vm6 = vcmask 58368   ;;  %v1234_v14 = vmov 0   ;;  %v628_v21 = vld [vmem:[#allocation2 + $0x8] sm:$0xff]  ;;  %v639_v23 = vld [vmem:[#allocation3] sm:$0xff]  ;;  %v590_v29 = vlaneseq }
 0x142   : > { %v599_v12 = vsel %vm598_vm6, %v588_v11, -inf  ;;  %v589_v13 = vld [vmem:[%s1599_s5] sm:$0x3]  ;;  %990 = vset.pattern.permute.xlu1 %v1234_v14  ;;  %991 = vset.pattern.permute.xlu0 %v1234_v14  ;;  %v640_v24 = vld [vmem:[#allocation3 + $0x8] sm:$0xff]  ;;  %p663_p3 = scmp.eq.s32.totalorder %s1219_s26, 0  ;;  %s865_s11 = sshll.u32 %s1219_s26, 7 }
 0x143   : > { %600 = vmax.xlane.f32.xlu0 %v599_v12  ;;  %593 = vperm.xlu1 %990, %v589_v13   ;;  %v627_v20 = vld [vmem:[#allocation2] sm:$0xff]  ;;  %v641_v25 = vadd.f32 %v640_v24, %v639_v23  ;;  %v1519_v30 = vand.u32 127, %v590_v29  ;;  %s695_s10 = sshll.u32 %s450_s9, 4  ;;  %s1537_s27 = scalar_lea.hbm %s1600_s6, %s865_s11  ;;  %s1539_s10 = int_to_ptr.vmem [resolvable:$true] %s695_s10 }
 0x144   : > { %v629_v22 = vadd.f32 %v628_v21, %v627_v20  ;;  %s682_s26 = scalar_lea.sflag [#allocation7], %s448_s29  ;;  %s1116_s19 = scalar_lea.vmem %s1539_s10, 128 }
 0x145   : > { %vm665_vm8 = vcmp.eq.s32.totalorder %v1519_v30, 0  ;;  %vm668_vm9 = vcmp.eq.s32.totalorder %v1519_v30, 1  ;;  %vm672_vm10 = vcmp.eq.s32.totalorder %v1519_v30, 2  ;;  %vm676_vm11 = vcmp.eq.s32.totalorder %v1519_v30, 3  ;;  %p1117_p10 = scmp.ne.s32.totalorder %s1539_s10, %s1116_s19  ;;  %p1628_p11 = scmp.ne.s32.totalorder %s1615_s13, 0 }
 0x146   : > { %s1235_s20 = smov [#allocation13]  }
 0x147   : > { %v651_v26 = vld [vmem:[#allocation4] sm:$0xff]  ;;  %p1118_p1 = pnand %p1117_p10, %p1628_p11  ;;  %s1120_s1 = sshll.u32 %s1235_s20, 4  ;;  %s1121_s1 = int_to_ptr.vmem [resolvable:$false] %s1120_s1 }
 0x148   : > { %v653_v27 = vsel %vm479_vm0, %v651_v26, 0.0  ;;  %s1122_s23 = scalar_lea.vmem %s1121_s1, 256  ;;  %p1123_p8 = scmp.lt.s32.totalorder %s1539_s10, %s1121_s1 }
 0x149   : > { %p1119_p5 = pneg %p1118_p1  ;;  %p1124_p9 = scmp.lt.s32.totalorder %s1122_s23, %s1116_s19 }
 0x14b   : > { %p1125_p6 = por %p1124_p9, %p1123_p8 }
 0x14d   : > { %p1126_p13 = pnand %p1125_p6, %p1119_p5 }
 0x1c2   : > { %v594_v31 = vpop.permute.xlu1 %593 }
 0x1c3   : > { %vm595_vm7 = vcmp.eq.s32.totalorder %v1519_v30, %v594_v31 }
 0x1c4   : > { %v863_v35 = vsel %vm595_vm7, 1.0, %v1233_v0 }
 0x1d0   : > { %v601_v15 = vpop.xlane.xlu0 %600 }
 0x1d1   : > { %v602_v16 = vsub.f32 %v588_v11, %v601_v15 }
 0x1d3   : > { %v603_v17 = vmul.f32 1.442695, %v602_v16 }
 0x1d5   : > { %992 = vpow2.f32 %v603_v17 }
 0x1df   : > { %v993_v18 = vpop.eup %992 }
 0x1e0   : > { %v605_v19 = vsel %vm598_vm6, %v993_v18, 0.0 }
 0x1e1   : > { %606 = vadd.xlane.f32.xlu0 %v605_v19 }
 0x1e5   : > { %630 = vadd.xlane.f32.xlu0 %v629_v22 }
 0x1e9   : > { %642 = vadd.xlane.f32.xlu0 %v641_v25 }
 0x1ed   : > { %654 = vadd.xlane.f32.xlu0 %v653_v27 }
 0x26e   : > { %v607_v28 = vpop.xlane.xlu0 %606 }
 0x26f   : > { %994 = vlog2.f32 %v607_v28 }
 0x272   : > { %v631_v39 = vpop.xlane.xlu0 %630 }
 0x273   : > { %v632_v42 = vrot.slane %v631_v39, 4 }
 0x275   : > { %v633_v45 = vadd.f32 %v632_v42, %v631_v39 }
 0x276   : > { %v643_v40 = vpop.xlane.xlu0 %642 }
 0x277   : > { %v644_v43 = vrot.slane %v643_v40, 4  ;;  %v634_v48 = vrot.slane %v633_v45, 2 }
 0x279   : > { %v995_v32 = vpop.eup %994  ;;  %v645_v46 = vadd.f32 %v644_v43, %v643_v40  ;;  %v635_v53 = vadd.f32 %v634_v48, %v633_v45 }
 0x27a   : > { %v609_v33 = vmul.f32 0.6931472, %v995_v32  ;;  %v655_v41 = vpop.xlane.xlu0 %654 }
 0x27b   : > { %v656_v44 = vrot.slane %v655_v41, 4  ;;  %v646_v50 = vrot.slane %v645_v46, 2  ;;  %v636_v58 = vrot.slane %v635_v53, 1 }
 0x27c   : > { %v610_v34 = vadd.f32 %v609_v33, %v601_v15 }
 0x27d   : > { %v657_v47 = vadd.f32 %v656_v44, %v655_v41  ;;  %v647_v55 = vadd.f32 %v646_v50, %v645_v46  ;;  %v637_v63 = vadd.f32 %v636_v58, %v635_v53 }
 0x27e   : > { %v611_v36 = vsub.f32 %v588_v11, %v610_v34 }
 0x27f   : > { %v658_v52 = vrot.slane %v657_v47, 2  ;;  %v648_v60 = vrot.slane %v647_v55, 1 }
 0x280   : > { %v612_v37 = vmul.f32 %v863_v35, %v611_v36 }
 0x281   : > { %v659_v56 = vadd.f32 %v658_v52, %v657_v47  ;;  %v649_v1 = vadd.f32 %v648_v60, %v647_v55 }
 0x282   : > { %v613_v38 = vsel %vm598_vm6, %v612_v37, 0.0 }
 0x283   : > { %614 = vadd.xlane.f32.xlu1 %v613_v38  ;;  %v660_v61 = vrot.slane %v659_v56, 1 }
 0x285   : > { %v661_v2 = vadd.f32 %v660_v61, %v659_v56 }
 0x310   : > { %v615_v49 = vpop.xlane.xlu1 %614 }
 0x311   : > { %v616_v51 = vrot.slane %v615_v49, 4 }
 0x313   : > { %v617_v0 = vadd.f32 %v616_v51, %v615_v49 }
 0x315   : > { %v618_v54 = vrot.slane %v617_v0, 2 }
 0x317   : > { %v619_v57 = vadd.f32 %v618_v54, %v617_v0 }
 0x319   : > { %v620_v59 = vrot.slane %v619_v57, 1 }
 0x31b   : > { %v621_v62 = vadd.f32 %v620_v59, %v619_v57 }
 0x31d   : > { %873 = vpush %v621_v62 }
 0x31e   : > { %875 = vpush %v637_v63 }
 0x31f   : > { %877 = vpush %v649_v1 }
 0x320   : > { %879 = vpush %v661_v2 }
 0x34e   : > { %s874_s8 = spop %873 }
 0x34f   : > { %s623_s12 = ssub.f32 0.0, %s874_s8  ;;  %s876_s24 = spop %875 }
 0x350   : > { %v666_v3 = vstv %s876_s24  ;;  %s878_s18 = spop %877 }
 0x351   : > { %s626_s15 = smul.f32 0.5, %s623_s12  ;;  %v667_v4 = vsel %vm665_vm8, %v666_v3, 0.0  ;;  %v669_v5 = vstv %s878_s18  ;;  %s880_s7 = spop %879 }
 0x352   : > { %v670_v6 = vsel %vm668_vm9, %v669_v5, 0.0  ;;  %v673_v7 = vstv %s880_s7 }
 0x353   : > { %s1641_s15 = smov (!%p663_p3, %s626_s15), 0.0  ;;  %v671_v8 = vadd.f32 %v670_v6, %v667_v4  ;;  %v674_v9 = vsel %vm672_vm10, %v673_v7, 0.0 }
 0x354   : > { %v677_v10 = vstv %s1641_s15 }
 0x355   : > { %v675_v11 = vadd.f32 %v674_v9, %v671_v8  ;;  %v678_v12 = vsel %vm676_vm11, %v677_v10, 0.0 }
 0x357   : > { %v679_v13 = vadd.f32 %v678_v12, %v675_v11 }
 0x359   : > { %680 = vst [vmem:[%s450_s9] sm:$0xff] %v679_v13 }
 0x35a   : > { %1129 = shalt.err (!%p1126_p13)
}
 0x35b   : > { %s1130_s29 = scalar_lea.hbm %s1537_s27, 128  ;;  %s1134_s8 = scalar_lea.hbm %s1600_s6, 256 }
 0x35c   : > { %p1131_p12 = scmp.ne.s32.totalorder %s1537_s27, %s1130_s29  ;;  %p1135_p4 = scmp.lt.u32.totalorder %s1537_s27, %s1600_s6 }
 0x35d   : > { %p1136_p7 = scmp.lt.u32.totalorder %s1134_s8, %s1130_s29  ;;  %p1138_p10 = scmp.lt.u32.totalorder %s1130_s29, %s1537_s27 }
 0x35e   : > { %p1132_p0 = pnand %p1131_p12, %p1628_p11 }
 0x35f   : > { %p1137_p3 = por %p1136_p7, %p1135_p4 }
 0x360   : > { %p1133_p2 = pneg %p1132_p0 }
 0x361   : > { %p1139_p1 = por %p1138_p10, %p1137_p3 }
 0x363   : > { %p1140_p5 = pnand %p1139_p1, %p1133_p2 }
 0x365   : > { %1143 = shalt.err (!%p1140_p5)
}
 0x366   : > { %889 = dma.vmem_to_hbm [thread:$0]  (%p1628_p11), %s1539_s10, 128, %s1537_s27, %s682_s26  }
 0x367 PF: > { %s707_s18 = sand.u32 1, %s1199_s21   ;;  %p1629_p8 = scmp.ne.s32.totalorder %s1616_s14, 0 }
 0x368   : > { %p1630_p9 = scmp.ge.s32.totalorder %s1227_s28, 2  ;;  %s708_s15 = scalar_lea.sflag [#allocation7], %s707_s18 }
 0x36a   : > { %p905_p6 = pnand %p1630_p9, %p1629_p8 }
 0x36c   : > { %1193 = dma.done.wait (!%p905_p6), %s708_s15, 128  }
 0x36d   : > { %1195 = vsyncadd (!%p905_p6), %s708_s15, 4294967168  ;;  %s28_s28 = sadd.s32 1, %s1227_s28   ;;  %s1631_s7 = sld [smem:[#allocation18_spill]] }
 0x36e   : > { %p25_p13 = scmp.ge.s32.totalorder %s28_s28, 4   ;;  %s1632_s23 = sld [smem:[#allocation21_spill]] }
 0x36f   : > { %s1633_s26 = sld [smem:[#allocation19_spill]]  ;;  %s1634_s27 = sld [smem:[#allocation20_spill]] }
 0x370   : > { %s1635_s21 = smov %s1203_s22  ;;  %s1637_s24 = smov %s1215_s25 }
 0x371   : > { %s1584_s25 = smov 0   ;;  %27 = sbr.rel (!%p25_p13) target bundleno = 13 (0xd), region = 138 }
 0x373   : > { %s1636_s22 = smov %s1631_s7 }
 0x378   :  { %713 = vsyncpa [#allocation6], 1 }
 0x379   :  { %715 = vsyncpa [#allocation6 + $0x1], 1 }
 0x37a   :  { %716 = vsyncpa [#allocation9], 1 }
 0x37b   :  { %718 = vsyncpa [#allocation9 + $0x1], 1 }
 0x37c   :  { %719 = vsyncpa [#allocation12], 1 }
 0x37d   :  { %721 = vsyncpa [#allocation12 + $0x1], 1 }
 0x37e   :  { %722 = vsyncpa [#allocation7], 1 }
 0x37f   :  { %724 = vsyncpa [#allocation7 + $0x1], 1 }

</bundles_post_ra>
